<compile_context>
chip_gen: v7x
topology: tpu7x:2x2x1
jax: 0.10.0
libtpu: 0.0.40
codegen_flags: <defaults>
</compile_context>

<pallas_src>
import functools

import jax
import jax.numpy as jnp
from jax.experimental import pallas as pl
from jax.experimental.pallas import tpu as pltpu


# --------------------------------------------------------------------------
# helpers
# --------------------------------------------------------------------------
def _round_up(x, m):
    return ((x + m - 1) // m) * m


def _vmem_limit_bytes():
    """Generation-aware VMEM limit: ~half of physical (64 MiB on v5e/v6e with
    128 MiB VMEM, 32 MiB on v7x with 64 MiB). Falls back to a safe 32 MiB."""
    try:
        cap = int(getattr(pltpu.get_tpu_info(), "vmem_capacity_bytes", 64 << 20))
    except Exception:  # pragma: no cover - query unavailable
        cap = 64 << 20
    return int(min(max(cap // 2, 32 << 20), 96 << 20))


def _pick_tile_n(n, c, out_cols, in_itemsize, vmem_budget, weight_buffers):
    """Pick an N tile: multiple of 128 when N allows (fills the MXU M-dim and
    amortizes per-step overhead), capped so large inputs get >=2 grid steps
    (v7x megacore), and sized so double-buffered in/out tiles plus the
    resident weight slab fit vmem_budget."""
    n8 = _round_up(max(n, 1), 8)
    fixed = weight_buffers * (c * in_itemsize + 4) * out_cols      # W (+ f32 bias)
    per_row = 2 * (c * in_itemsize + out_cols * 4)                 # dbl-buf in + f32 out
    t = max(8, (vmem_budget - fixed) // max(per_row, 1))
    if n8 >= 128:
        t = max(128, (int(t) // 128) * 128)
    else:
        t = max(8, (int(t) // 8) * 8)
    t = min(int(t), 2048, n8)
    # Keep >=2 grid steps when there is enough work (feeds both TCs on v7x).
    if n8 >= 256 and t > n8 // 2:
        t = max(128, ((n8 // 2) // 128) * 128)
    return max(8, t)


# --------------------------------------------------------------------------
# kernel
# --------------------------------------------------------------------------
def _mist_heads_kernel(p_ref, w_ref, b_ref, out_ref, *, num_classes):
    """Fused 8-head linear + row-softmax for the 4 classification heads.

    p_ref  : [tile_n, C]        pooled features (bf16 or f32)
    w_ref  : [C, OUT_PAD]       packed weights (resident across the grid)
    b_ref  : [1, OUT_PAD]       packed biases  (f32, resident)
    out_ref: [tile_n, OUT_PAD]  lane-dense f32 output slab
    """
    K = num_classes
    y = jnp.dot(p_ref[...], w_ref[...], preferred_element_type=jnp.float32)
    y = y + b_ref[...]                                     # f32 [tile_n, OUT_PAD]

    # First 4*K columns are the row-softmax heads (cls, ref1, ref2, ref3).
    # Direct slice stores (no concatenate temporary); denominator on the EUP.
    for h in range(4):
        z = y[:, h * K:(h + 1) * K]
        m = jnp.max(z, axis=1, keepdims=True)
        e = jnp.exp(z - m)
        inv = pl.reciprocal(jnp.sum(e, axis=1, keepdims=True), approx=True)
        out_ref[:, h * K:(h + 1) * K] = (e * inv).astype(out_ref.dtype)
    # det logits, bbox preds and zero padding pass through raw.
    out_ref[:, 4 * K:] = y[:, 4 * K:].astype(out_ref.dtype)


# --------------------------------------------------------------------------
# parameter packing (done once at model setup, not per forward call)
# --------------------------------------------------------------------------
def pack_params(params, dtype=jnp.bfloat16):
    """Pack the 8 heads into one [C, OUT_PAD] weight slab + [1, OUT_PAD] bias.

    Head order: cls, ref1, ref2, ref3, det, bbox1, bbox2, bbox3.
    Weights are stored [in, out] (transposed from torch's [out, in]).
    Weights default to bf16 (f32 accumulation in-kernel); bias stays f32.
    """
    (wc, bc, wd, bd, w1, b1, wbb1, bbb1,
     w2, b2, wbb2, bbb2, w3, b3, wbb3, bbb3) = params
    K = wc.shape[1]
    B = wbb1.shape[1]
    w_all = jnp.concatenate([wc, w1, w2, w3, wd, wbb1, wbb2, wbb3], axis=1)
    b_all = jnp.concatenate([bc, b1, b2, b3, bd, bbb1, bbb2, bbb3]).reshape(1, -1)
    total = 5 * K + 3 * B
    out_cols = _round_up(total, 128)                      # lane-dense output slab
    pad = out_cols - total
    if pad:
        w_all = jnp.pad(w_all, ((0, 0), (0, pad)))
        b_all = jnp.pad(b_all, ((0, 0), (0, pad)))
    return w_all.astype(dtype), b_all.astype(jnp.float32), K, B


# --------------------------------------------------------------------------
# forward
# --------------------------------------------------------------------------
@functools.partial(
    jax.jit,
    static_argnames=("num_classes", "bbox_dim", "proposal_counts", "tile_n"))
def mist_predictor_forward(x, w_all, b_all, *, num_classes, bbox_dim,
                           proposal_counts, tile_n=None):
    """Eval-mode forward of MISTPredictor.

    x : [N, C, H, W] (NCHW) or already pooled [N, C].
    Returns (cls_prob, det_prob, [ref1, ref2, ref3], [bbox1, bbox2, bbox3]).
    """
    if x.ndim == 4:
        # AdaptiveAvgPool2d(1) + flatten, done with XLA on the big tensor so
        # the kernel input is a lane-dense [N, C] slab.
        pooled = jnp.mean(x, axis=(2, 3))
    else:
        pooled = x
    N, C = pooled.shape
    K, B = num_classes, bbox_dim
    out_cols = w_all.shape[1]
    assert out_cols % 128 == 0 and out_cols >= 5 * K + 3 * B

    counts = tuple(int(c) for c in proposal_counts)
    assert sum(counts) == N, "proposal counts must sum to number of proposals"

    itemsize = jnp.dtype(w_all.dtype).itemsize
    vmem_limit = _vmem_limit_bytes()
    resident_bytes = (C * itemsize + 4) * out_cols
    single_buffer_w = resident_bytes > (8 << 20)          # large weight slab
    wbufs = 1 if single_buffer_w else 2

    tn = tile_n if tile_n is not None else _pick_tile_n(
        N, C, out_cols, itemsize,
        vmem_budget=(vmem_limit * 3) // 4, weight_buffers=wbufs)
    tn = max(8, _round_up(int(tn), 8))
    tn = min(tn, _round_up(N, 8))
    n_pad = _round_up(N, tn)

    pooled = pooled.astype(w_all.dtype)                   # bf16 activations
    if n_pad != N:
        pooled = jnp.pad(pooled, ((0, n_pad - N), (0, 0)))

    def _resident(shape):
        # Weight/bias: same block every grid step. Single-buffer big slabs so
        # VMEM headroom goes to larger N tiles (matters on v7x's 64 MiB).
        if single_buffer_w:
            try:
                return pl.BlockSpec(shape, lambda i: (0, 0),
                                    pipeline_mode=pl.Buffered(1))
            except Exception:  # pragma: no cover - older BlockSpec signature
                pass
        return pl.BlockSpec(shape, lambda i: (0, 0))

    # ---- main kernel: tiled over proposals, weights resident, one dense slab
    slab = pl.pallas_call(
        functools.partial(_mist_heads_kernel, num_classes=K),
        out_shape=jax.ShapeDtypeStruct((n_pad, out_cols), jnp.float32),
        grid_spec=pltpu.PrefetchScalarGridSpec(
            num_scalar_prefetch=0,
            grid=(n_pad // tn,),
            in_specs=[
                pl.BlockSpec((tn, C), lambda i: (i, 0)),   # pooled tile
                _resident((C, out_cols)),                  # weights (resident)
                _resident((1, out_cols)),                  # bias (resident)
            ],
            out_specs=pl.BlockSpec((tn, out_cols), lambda i: (i, 0)),
        ),
        compiler_params=pltpu.CompilerParams(
            dimension_semantics=("parallel",),             # shard N across TCs (v7x)
            vmem_limit_bytes=vmem_limit,
        ),
    )(pooled, w_all, b_all)

    # ---- slice the packed slab apart (wrapper-side, cheap)
    cls_prob = slab[:N, 0:K]
    ref_probs = [slab[:N, K:2 * K], slab[:N, 2 * K:3 * K], slab[:N, 3 * K:4 * K]]
    det_logits = slab[:N, 4 * K:5 * K]                    # raw det logits [N, K]
    off = 5 * K
    bbox_preds = [slab[:N, off:off + B],
                  slab[:N, off + B:off + 2 * B],
                  slab[:N, off + 2 * B:off + 3 * B]]

    # ---- det head: per-image softmax over dim=0 on the tiny [N, K] slice,
    # done in plain XLA (no extra pallas_call / HBM roundtrip).
    parts, s = [], 0
    for cnt in counts:
        if cnt == 0:
            continue
        parts.append(jax.nn.softmax(det_logits[s:s + cnt], axis=0))
        s += cnt
    det_prob = parts[0] if len(parts) == 1 else jnp.concatenate(parts, axis=0)

    return cls_prob, det_prob, ref_probs, bbox_preds


# --------------------------------------------------------------------------
# pure-JAX reference (matches the PyTorch eval-mode forward)
# --------------------------------------------------------------------------
def _ref_forward(x4, params, proposal_counts):
    (wc, bc, wd, bd, w1, b1, wbb1, bbb1,
     w2, b2, wbb2, bbb2, w3, b3, wbb3, bbb3) = params
    pooled = x4.mean(axis=(2, 3))
    lin = lambda w, b: pooled @ w + b
    cls_p = jax.nn.softmax(lin(wc, bc), axis=1)
    det_logit = lin(wd, bd)
    parts, s = [], 0
    for c in proposal_counts:
        parts.append(jax.nn.softmax(det_logit[s:s + c], axis=0))
        s += c
    det_p = jnp.concatenate(parts, axis=0)
    refs = [jax.nn.softmax(lin(w1, b1), axis=1),
            jax.nn.softmax(lin(w2, b2), axis=1),
            jax.nn.softmax(lin(w3, b3), axis=1)]
    bbs = [lin(wbb1, bbb1), lin(wbb2, bbb2), lin(wbb3, bbb3)]
    return cls_p, det_p, refs, bbs


def init_params(key, in_channels, num_classes, num_bbox_reg_classes):
    """nn.init.normal_(std=0.001) on weights, zeros on biases."""
    shapes = [
        (in_channels, num_classes),               # cls_score
        (in_channels, num_classes),               # det_score
        (in_channels, num_classes),               # ref1
        (in_channels, num_bbox_reg_classes * 4),  # bbox_pred1
        (in_channels, num_classes),               # ref2
        (in_channels, num_bbox_reg_classes * 4),  # bbox_pred2
        (in_channels, num_classes),               # ref3
        (in_channels, num_bbox_reg_classes * 4),  # bbox_pred3
    ]
    keys = jax.random.split(key, len(shapes))
    params = []
    for k, shp in zip(keys, shapes):
        w = 0.001 * jax.random.normal(k, shp, dtype=jnp.float32)
        b = jnp.zeros((shp[1],), dtype=jnp.float32)
        params.extend([w, b])
    return tuple(params)


if __name__ == "__main__":
    # Small, module-consistent shapes.
    N = 12            # total proposals across images
    C = 32            # in_channels
    H = W = 4         # ROI feature spatial size
    NUM_CLASSES = 8
    CLS_AGNOSTIC_BBOX_REG = False
    NUM_BBOX_REG_CLASSES = 2 if CLS_AGNOSTIC_BBOX_REG else NUM_CLASSES
    proposal_counts = (5, 7)   # len(p) for p in proposals

    key = jax.random.PRNGKey(0)
    kx, kp = jax.random.split(key)
    x = jax.random.normal(kx, (N, C, H, W), dtype=jnp.float32)  # NCHW
    params = init_params(kp, C, NUM_CLASSES, NUM_BBOX_REG_CLASSES)

    # Packing is done once at setup (hoisted out of the per-call path).
    # bf16 weights/activations with f32 accumulation (perf-review item 1).
    w_all, b_all, K, B = pack_params(params, dtype=jnp.bfloat16)

    # tile_n=8 -> 2 grid steps, exercising the tiled pipeline with resident weights.
    outs = mist_predictor_forward(
        x, w_all, b_all, num_classes=K, bbox_dim=B,
        proposal_counts=proposal_counts, tile_n=8)
    outs = jax.block_until_ready(outs)

    ref = _ref_forward(x, params, proposal_counts)

    # bf16 operands + approx reciprocal -> slightly looser tolerances than f32.
    cls_p, det_p, refs, bbs = outs
    rcls, rdet, rrefs, rbbs = ref
    assert jnp.allclose(cls_p, rcls, atol=5e-3, rtol=5e-2)
    assert jnp.allclose(det_p, rdet, atol=5e-3, rtol=5e-2)
    for a, b in zip(refs, rrefs):
        assert jnp.allclose(a, b, atol=5e-3, rtol=5e-2)
    for a, b in zip(bbs, rbbs):
        assert jnp.allclose(a, b, atol=5e-3, rtol=5e-2)

    print("KERNEL_OK")
</pallas_src>

<mosaic_0001>
module attributes {stable_mosaic.version = 11 : i64} {
  func.func @_mist_heads_kernel(%arg0: i32, %arg1: memref<8x32xbf16, #tpu.memory_space<vmem>>, %arg2: memref<32x256xbf16, #tpu.memory_space<vmem>>, %arg3: memref<1x256xf32, #tpu.memory_space<vmem>>, %arg4: memref<8x256xf32, #tpu.memory_space<vmem>>) attributes {dimension_semantics = [#tpu.dimension_semantics<parallel>], iteration_bounds = array<i64: 2>, scalar_prefetch = 0 : i64, scratch_operands = 0 : i64, tpu.core_type = #tpu.core_type<tc>, window_params = [{transform_indices = @transform_0, window_bounds = array<i64: 8, 32>}, {pipeline_mode = #tpu.pipeline_mode<synchronous>, transform_indices = @transform_1, window_bounds = array<i64: 32, 256>}, {pipeline_mode = #tpu.pipeline_mode<synchronous>, transform_indices = @transform_2, window_bounds = array<i64: 1, 256>}, {transform_indices = @transform_3, window_bounds = array<i64: 8, 256>}]} {
    %c0 = arith.constant 0 : index
    %c0_0 = arith.constant 0 : index
    %0 = vector.load %arg1[%c0, %c0_0] : memref<8x32xbf16, #tpu.memory_space<vmem>>, vector<8x32xbf16>
    %c0_1 = arith.constant 0 : index
    %c0_2 = arith.constant 0 : index
    %1 = vector.load %arg2[%c0_1, %c0_2] : memref<32x256xbf16, #tpu.memory_space<vmem>>, vector<32x256xbf16>
    %cst = arith.constant dense<0.000000e+00> : vector<8x256xf32>
    %2 = tpu.matmul %0, %1, %cst {dimension_numbers = #tpu.dot_dimension_numbers<[1], [0], [0], [1], [0, 0, 1, 1], [], []>} : vector<8x32xbf16>, vector<32x256xbf16>, vector<8x256xf32> -> vector<8x256xf32>
    %c0_3 = arith.constant 0 : index
    %c0_4 = arith.constant 0 : index
    %3 = vector.load %arg3[%c0_3, %c0_4] : memref<1x256xf32, #tpu.memory_space<vmem>>, vector<1x256xf32>
    %4 = vector.broadcast %3 : vector<1x256xf32> to vector<8x256xf32>
    %5 = arith.addf %2, %4 : vector<8x256xf32>
    %6 = vector.extract_strided_slice %5 {offsets = [0, 0], sizes = [8, 8], strides = [1, 1]} : vector<8x256xf32> to vector<8x8xf32>
    %cst_5 = arith.constant dense<0xFF800000> : vector<8xf32>
    %7 = vector.multi_reduction <maximumf>, %6, %cst_5 [1] : vector<8x8xf32> to vector<8xf32>
    %8 = vector.shape_cast %7 : vector<8xf32> to vector<8x1xf32>
    %9 = vector.broadcast %8 : vector<8x1xf32> to vector<8x8xf32>
    %10 = arith.subf %6, %9 : vector<8x8xf32>
    %11 = math.exp %10 : vector<8x8xf32>
    %cst_6 = arith.constant dense<0.000000e+00> : vector<8xf32>
    %12 = vector.multi_reduction <add>, %11, %cst_6 [1] : vector<8x8xf32> to vector<8xf32>
    %13 = vector.shape_cast %12 : vector<8xf32> to vector<8x1xf32>
    %14 = tpu.reciprocal %13 {approx = true} : vector<8x1xf32> -> vector<8x1xf32>
    %15 = vector.broadcast %14 : vector<8x1xf32> to vector<8x8xf32>
    %16 = arith.mulf %11, %15 : vector<8x8xf32>
    %c0_7 = arith.constant 0 : index
    %c0_8 = arith.constant 0 : index
    %17 = vector.load %arg4[%c0_7, %c0_8] : memref<8x256xf32, #tpu.memory_space<vmem>>, vector<8x8xf32>
    tpu.vector_store %arg4[%c0_7, %c0_8], %16 {strides = array<i32>} : memref<8x256xf32, #tpu.memory_space<vmem>>, vector<8x8xf32>,
    %18 = vector.extract_strided_slice %5 {offsets = [0, 8], sizes = [8, 8], strides = [1, 1]} : vector<8x256xf32> to vector<8x8xf32>
    %cst_9 = arith.constant dense<0xFF800000> : vector<8xf32>
    %19 = vector.multi_reduction <maximumf>, %18, %cst_9 [1] : vector<8x8xf32> to vector<8xf32>
    %20 = vector.shape_cast %19 : vector<8xf32> to vector<8x1xf32>
    %21 = vector.broadcast %20 : vector<8x1xf32> to vector<8x8xf32>
    %22 = arith.subf %18, %21 : vector<8x8xf32>
    %23 = math.exp %22 : vector<8x8xf32>
    %cst_10 = arith.constant dense<0.000000e+00> : vector<8xf32>
    %24 = vector.multi_reduction <add>, %23, %cst_10 [1] : vector<8x8xf32> to vector<8xf32>
    %25 = vector.shape_cast %24 : vector<8xf32> to vector<8x1xf32>
    %26 = tpu.reciprocal %25 {approx = true} : vector<8x1xf32> -> vector<8x1xf32>
    %27 = vector.broadcast %26 : vector<8x1xf32> to vector<8x8xf32>
    %28 = arith.mulf %23, %27 : vector<8x8xf32>
    %c0_11 = arith.constant 0 : index
    %c8 = arith.constant 8 : index
    %29 = vector.load %arg4[%c0_11, %c8] : memref<8x256xf32, #tpu.memory_space<vmem>>, vector<8x8xf32>
    tpu.vector_store %arg4[%c0_11, %c8], %28 {strides = array<i32>} : memref<8x256xf32, #tpu.memory_space<vmem>>, vector<8x8xf32>,
    %30 = vector.extract_strided_slice %5 {offsets = [0, 16], sizes = [8, 8], strides = [1, 1]} : vector<8x256xf32> to vector<8x8xf32>
    %cst_12 = arith.constant dense<0xFF800000> : vector<8xf32>
    %31 = vector.multi_reduction <maximumf>, %30, %cst_12 [1] : vector<8x8xf32> to vector<8xf32>
    %32 = vector.shape_cast %31 : vector<8xf32> to vector<8x1xf32>
    %33 = vector.broadcast %32 : vector<8x1xf32> to vector<8x8xf32>
    %34 = arith.subf %30, %33 : vector<8x8xf32>
    %35 = math.exp %34 : vector<8x8xf32>
    %cst_13 = arith.constant dense<0.000000e+00> : vector<8xf32>
    %36 = vector.multi_reduction <add>, %35, %cst_13 [1] : vector<8x8xf32> to vector<8xf32>
    %37 = vector.shape_cast %36 : vector<8xf32> to vector<8x1xf32>
    %38 = tpu.reciprocal %37 {approx = true} : vector<8x1xf32> -> vector<8x1xf32>
    %39 = vector.broadcast %38 : vector<8x1xf32> to vector<8x8xf32>
    %40 = arith.mulf %35, %39 : vector<8x8xf32>
    %c0_14 = arith.constant 0 : index
    %c16 = arith.constant 16 : index
    %41 = vector.load %arg4[%c0_14, %c16] : memref<8x256xf32, #tpu.memory_space<vmem>>, vector<8x8xf32>
    tpu.vector_store %arg4[%c0_14, %c16], %40 {strides = array<i32>} : memref<8x256xf32, #tpu.memory_space<vmem>>, vector<8x8xf32>,
    %42 = vector.extract_strided_slice %5 {offsets = [0, 24], sizes = [8, 8], strides = [1, 1]} : vector<8x256xf32> to vector<8x8xf32>
    %cst_15 = arith.constant dense<0xFF800000> : vector<8xf32>
    %43 = vector.multi_reduction <maximumf>, %42, %cst_15 [1] : vector<8x8xf32> to vector<8xf32>
    %44 = vector.shape_cast %43 : vector<8xf32> to vector<8x1xf32>
    %45 = vector.broadcast %44 : vector<8x1xf32> to vector<8x8xf32>
    %46 = arith.subf %42, %45 : vector<8x8xf32>
    %47 = math.exp %46 : vector<8x8xf32>
    %cst_16 = arith.constant dense<0.000000e+00> : vector<8xf32>
    %48 = vector.multi_reduction <add>, %47, %cst_16 [1] : vector<8x8xf32> to vector<8xf32>
    %49 = vector.shape_cast %48 : vector<8xf32> to vector<8x1xf32>
    %50 = tpu.reciprocal %49 {approx = true} : vector<8x1xf32> -> vector<8x1xf32>
    %51 = vector.broadcast %50 : vector<8x1xf32> to vector<8x8xf32>
    %52 = arith.mulf %47, %51 : vector<8x8xf32>
    %c0_17 = arith.constant 0 : index
    %c24 = arith.constant 24 : index
    %53 = vector.load %arg4[%c0_17, %c24] : memref<8x256xf32, #tpu.memory_space<vmem>>, vector<8x8xf32>
    tpu.vector_store %arg4[%c0_17, %c24], %52 {strides = array<i32>} : memref<8x256xf32, #tpu.memory_space<vmem>>, vector<8x8xf32>,
    %54 = vector.extract_strided_slice %5 {offsets = [0, 32], sizes = [8, 224], strides = [1, 1]} : vector<8x256xf32> to vector<8x224xf32>
    %c0_18 = arith.constant 0 : index
    %c32 = arith.constant 32 : index
    %55 = vector.load %arg4[%c0_18, %c32] : memref<8x256xf32, #tpu.memory_space<vmem>>, vector<8x224xf32>
    tpu.vector_store %arg4[%c0_18, %c32], %54 {strides = array<i32>} : memref<8x256xf32, #tpu.memory_space<vmem>>, vector<8x224xf32>,
    return
  }
  func.func @transform_0(%arg0: i32) -> (i32, i32) {
    %c0_i32 = arith.constant 0 : i32
    %c0_i32_0 = arith.constant 0 : i32
    return %arg0, %c0_i32 : i32, i32
  }
  func.func @transform_1(%arg0: i32) -> (i32, i32) {
    %c0_i32 = arith.constant 0 : i32
    %c0_i32_0 = arith.constant 0 : i32
    %c0_i32_1 = arith.constant 0 : i32
    return %c0_i32, %c0_i32_0 : i32, i32
  }
  func.func @transform_2(%arg0: i32) -> (i32, i32) {
    %c0_i32 = arith.constant 0 : i32
    %c0_i32_0 = arith.constant 0 : i32
    %c0_i32_1 = arith.constant 0 : i32
    return %c0_i32, %c0_i32_0 : i32, i32
  }
  func.func @transform_3(%arg0: i32) -> (i32, i32) {
    %c0_i32 = arith.constant 0 : i32
    %c0_i32_0 = arith.constant 0 : i32
    return %arg0, %c0_i32 : i32, i32
  }
}

</mosaic_0001>

<bundles_post_ra>
// kernel: mist_predictor_forward.1
= control target key start
LH: loop header
LB: loop body
LE: loop exit
PB: predicated region body
PF: predicated region fallthrough
CT: control target
= control target key end

     0   :  { %s455_s12 = smov 0   ;;  %s518_s0 = inlined_call_operand.vmem [shape: bf16[16,32], index: 0, kind: input, shape index: {}]   ;;  %s519_s1 = inlined_call_operand.vmem [shape: bf16[32,256], index: 1, kind: input, shape index: {}]   ;;  %s520_s2 = inlined_call_operand.vmem [shape: f32[1,256], index: 2, kind: input, shape index: {}]   ;;  %s521_s3 = inlined_call_operand.vmem [shape: f32[16,256], index: 3, kind: output, shape index: {}]  }
   0x1 LB: > { %s373_s13 = sadd.s32 4294967295, %s429_s12   ;;  %p377_p0 = scmp.ge.s32.totalorder %s429_s12, 1  ;;  %s429_s12 = sphi %s455_s12, %s13_s12  }
   0x2   : > { %p136_p1 = scmp.lt.s32.totalorder %s429_s12, 3 }
   0x4   : > { %p137_p2 = pnand %p377_p0, %p136_p1 }
   0x5   : > { %v401_v0 = vld [vmem:[%s519_s1 + $0x4] ss:$8 sps:$4 sm:$0xff] (!%p137_p2)   ;;  %p159_p3 = scmp.lt.s32.totalorder (!%p137_p2), %s373_s13, 1  ;;  %v403_v1 = vld [vmem:[%s519_s1] ss:$8 sps:$4 sm:$0xff] (!%p137_p2)   ;;  %v431_v2 = vmov (!%p137_p2), 0   ;;  %v176_v6 = vlaneseq (!%p137_p2) }
   0x6   : > { %140 = sbr.rel (%p137_p2) target bundleno = 670 (0x29e), region = 32  ;;  %242 = vmatprep.mubr.bf16.mxu0 (!%p137_p2), %v431_v2  ;;  %210 = vmatprep.subr.bf16.mxu0 (!%p137_p2), %v401_v0  ;;  %v404_v3 = vld [vmem:[%s519_s1 + $0x14] ss:$8 sps:$4 sm:$0xff] (!%p137_p2)   ;;  %v406_v4 = vld [vmem:[%s519_s1 + $0x10] ss:$8 sps:$4 sm:$0xff] (!%p137_p2)   ;;  %vm206_vm0 = vcmask (!%p137_p2), 261120  }
   0x7   : > { %211 = vmatpush1.bf16.msra.mxu0 (!%p137_p2), %v403_v1  ;;  %v177_v7 = vshrl.u32 (!%p137_p2), %v176_v6, 7  ;;  %v174_v9 = vld [vmem:[%s520_s2] sm:$0x3] (!%p137_p2)  ;;  %vm298_vm1 = vcmask (!%p137_p2), 261312   ;;  %vm264_vm2 = vcmask (!%p137_p2), 130112   ;;  %vm281_vm3 = vcmask (!%p137_p2), 195712  }
   0x8   : > { %212 = vmatprep.subr.bf16.mxu0 (!%p137_p2), %v404_v3  ;;  %vm251_vm4 = vcmask (!%p137_p2), 64512   ;;  %s432_s5 = smov (!%p137_p2), 120   ;;  %s433_s6 = smov (!%p137_p2), 112   ;;  %vm315_vm5 = vcmask (!%p137_p2), 1047808  }
   0x9   : > { %v178_v8 = vsub.s32 (!%p137_p2), 0, %v177_v7  ;;  %v182_v10 = vsub.s32 (!%p137_p2), 1, %v177_v7  ;;  %s434_s7 = smov (!%p137_p2), 104  }
   0xb   : > { %213 = vmatpush1.bf16.msra.mxu0 (!%p137_p2), %v406_v4  ;;  %v179_v11 = vrot.slane (!%p137_p2), %v174_v9, %v178_v8  ;;  %v183_v12 = vrot.slane (!%p137_p2), %v174_v9, %v182_v10 }
   0xd   : > { %s523_s13 = smov (!%p159_p3, %s373_s13), 1 }
   0xe   : > { %s378_s22 = sshll.u32 %s523_s13, 2  ;;  %s388_s28 = sshll.u32 %s523_s13, 4 }
   0xf   : > { %s162_s25 = scalar_lea.vmem %s518_s0, %s378_s22  ;;  %s484_s4 = scalar_lea.vmem %s521_s3, %s388_s28 }
  0x10   : > { %v169_v5 = vld [vmem:[%s162_s25] sm:$0xf] }
  0x11   : > { %385 = vmatmul.mubr.msk.bf16.vlgmr.msra.gmra.mrb[0].mxu0 %vm206_vm0, %v169_v5 }
  0xe4   : > { %v244_v13 = vpop.f32.mrb[0].mxu0 }
  0xe5   : > { %v486_v14 = vadd.f32 %v244_v13, %v179_v11  ;;  %v246_v15 = vpop.f32.mrb[1].mxu0 }
  0xe6   : > { %v247_v16 = vadd.f32 %v246_v15, %v183_v12  ;;  %v248_v17 = vpop.f32.mrb[2].mxu0 }
  0xe7   : > { %v249_v18 = vpop.f32.mrb[3].mxu0  ;;  %v299_v19 = vsel %vm298_vm1, %v486_v14, -inf  ;;  %v265_v20 = vsel %vm264_vm2, %v486_v14, -inf  ;;  %v282_v21 = vsel %vm281_vm3, %v486_v14, -inf  ;;  %v252_v22 = vsel %vm251_vm4, %v486_v14, -inf }
  0xe8   : > { %317 = vst [vmem:[%s484_s4 + $0x8] sm:$0xff] %v247_v16  ;;  %300 = vmax.xlane.f32.xlu1 %v299_v19  ;;  %266 = vmax.xlane.f32.xlu0 %v265_v20 }
  0xec   : > { %283 = vmax.xlane.f32.xlu0 %v282_v21  ;;  %253 = vmax.xlane.f32.xlu1 %v252_v22 }
 0x175   : > { %v267_v23 = vpop.xlane.xlu0 %266  ;;  %v301_v25 = vpop.xlane.xlu1 %300 }
 0x176   : > { %v268_v24 = vsub.f32 %v486_v14, %v267_v23  ;;  %v302_v28 = vsub.f32 %v486_v14, %v301_v25 }
 0x178   : > { %v269_v26 = vmul.f32 1.442695, %v268_v24  ;;  %v303_v31 = vmul.f32 1.442695, %v302_v28 }
 0x179   : > { %v284_v27 = vpop.xlane.xlu0 %283  ;;  %v254_v35 = vpop.xlane.xlu1 %253 }
 0x17a   : > { %v285_v29 = vsub.f32 %v486_v14, %v284_v27  ;;  %407 = vpow2.f32 %v269_v26  ;;  %v255_v36 = vsub.f32 %v486_v14, %v254_v35 }
 0x17c   : > { %v286_v30 = vmul.f32 1.442695, %v285_v29  ;;  %v256_v37 = vmul.f32 1.442695, %v255_v36 }
 0x17e   : > { %409 = vpow2.f32 %v286_v30 }
 0x17f   : > { %411 = vpow2.f32 %v303_v31 }
 0x180   : > { %413 = vpow2.f32 %v256_v37 }
 0x184   : > { %v408_v32 = vpop.eup %407 }
 0x185   : > { %272 = vrot.lane.b32.xlu0 %v408_v32, %s432_s5 }
 0x188   : > { %v410_v33 = vpop.eup %409 }
 0x189   : > { %289 = vrot.lane.b32.xlu1 %v410_v33, %s433_s6  ;;  %v412_v34 = vpop.eup %411 }
 0x18a   : > { %v414_v38 = vpop.eup %413 }
 0x18b   : > { %v258_v39 = vsel %vm251_vm4, %v414_v38, 0.0 }
 0x18d   : > { %306 = vrot.lane.b32.xlu1 %v412_v34, %s434_s7 }
 0x1b1   : > { %259 = vadd.xlane.f32.xlu1 %v258_v39 }
 0x1f7   : > { %v273_v40 = vpop.permute.xlu0 %272 }
 0x1f8   : > { %v275_v41 = vsel %vm251_vm4, %v273_v40, 0.0 }
 0x1f9   : > { %276 = vadd.xlane.f32.xlu0 %v275_v41 }
 0x1fb   : > { %v290_v42 = vpop.permute.xlu1 %289 }
 0x1fc   : > { %v292_v43 = vsel %vm251_vm4, %v290_v42, 0.0 }
 0x1fd   : > { %293 = vadd.xlane.f32.xlu0 %v292_v43 }
 0x1ff   : > { %v307_v44 = vpop.permute.xlu1 %306 }
 0x200   : > { %v309_v45 = vsel %vm251_vm4, %v307_v44, 0.0 }
 0x201   : > { %310 = vadd.xlane.f32.xlu0 %v309_v45 }
 0x23e   : > { %v260_v46 = vpop.xlane.xlu1 %259 }
 0x23f   : > { %415 = vrcp.f32 %v260_v46 }
 0x249   : > { %v416_v47 = vpop.eup %415 }
 0x24a   : > { %v262_v48 = vmul.f32 %v416_v47, %v414_v38 }
 0x24c   : > { %263 = vst.msk [vmem:[%s484_s4] sm:$0xff] %vm251_vm4, %v262_v48 }
 0x286   : > { %v277_v49 = vpop.xlane.xlu0 %276 }
 0x287   : > { %417 = vrcp.f32 %v277_v49 }
 0x28a   : > { %v294_v50 = vpop.xlane.xlu0 %293 }
 0x28b   : > { %419 = vrcp.f32 %v294_v50 }
 0x28e   : > { %v311_v51 = vpop.xlane.xlu0 %310 }
 0x28f   : > { %421 = vrcp.f32 %v311_v51 }
 0x291   : > { %v418_v52 = vpop.eup %417 }
 0x292   : > { %v279_v53 = vmul.f32 %v418_v52, %v408_v32 }
 0x294   : > { %280 = vst.msk [vmem:[%s484_s4] sm:$0xff] %vm264_vm2, %v279_v53 }
 0x295   : > { %v420_v54 = vpop.eup %419 }
 0x296   : > { %v296_v55 = vmul.f32 %v420_v54, %v410_v33 }
 0x298   : > { %297 = vst.msk [vmem:[%s484_s4] sm:$0xff] %vm281_vm3, %v296_v55 }
 0x299   : > { %v422_v56 = vpop.eup %421 }
 0x29a   : > { %v313_v57 = vmul.f32 %v422_v56, %v412_v34 }
 0x29c   : > { %314 = vst.msk [vmem:[%s484_s4] sm:$0xff] %vm298_vm1, %v313_v57 }
 0x29d   : > { %316 = vst.msk [vmem:[%s484_s4] sm:$0xff] %vm315_vm5, %v486_v14 }
 0x29e PF: > { %s13_s12 = sadd.s32 1, %s429_s12  }
 0x29f   : > { %p10_p4 = scmp.ge.s32.totalorder %s13_s12, 4  }
 0x2a1   :  { %12 = sbr.rel (!%p10_p4) target bundleno = 1 (0x1), region = 62 }

</bundles_post_ra>
